<compile_context>
chip_gen: v6e
topology: v6e:2x2x1
jax: 0.10.0
libtpu: 0.0.40
codegen_flags: <defaults>
</compile_context>

<pallas_src>
import jax
import jax.numpy as jnp
from jax.experimental import pallas as pl
from jax.experimental.pallas import tpu as pltpu

LANE = 128


def mlp_kernel(x_ref, w0_ref, b0_ref, w1_ref, b1_ref, w2_ref, b2_ref, o_ref):
    tb = x_ref.shape[1]  # batch tile (on lanes)

    def dense(w_ref, b_ref, h):
        # y[o, :] = b[o] + sum_k w[o, k] * h[k, :]
        # Unrolled VPU FMA chain over the (tiny) contraction dim -> no MXU.
        out_dim, in_dim = w_ref.shape
        w = w_ref[...]                                    # (out, in)
        acc = jnp.broadcast_to(b_ref[...], (out_dim, tb))  # (out, tb), hoisted once
        for k in range(in_dim):
            acc = acc + w[:, k:k + 1] * h[k:k + 1, :]     # (out,1)*(1,tb) -> (out,tb)
        return acc

    h = jnp.maximum(dense(w0_ref, b0_ref, x_ref[...]), 0.0)   # (8, tb)
    h = jnp.maximum(dense(w1_ref, b1_ref, h), 0.0)            # (8, tb)
    y = dense(w2_ref, b2_ref, h)                              # (5, tb)
    o_ref[...] = y.astype(o_ref.dtype)


def custom_model_forward(x, params, *, tile_b=1024):
    """x: (B, 7) float32.  params: PyTorch-layout weights w{0,1,2}: (out,in), b{0,1,2}: (out,)."""
    B, f_in = x.shape
    assert f_in == params["w0"].shape[1]
    n_out = params["w2"].shape[0]

    # Batch maps to the lane axis -> tile must be a multiple of 128; pad B up to the tile.
    tile_b = max(LANE, (int(tile_b) // LANE) * LANE)
    tile_b = min(tile_b, ((B + LANE - 1) // LANE) * LANE)
    n_tiles = (B + tile_b - 1) // tile_b
    b_pad = n_tiles * tile_b

    # Lane-dense transposed layout: batch on lanes, features on sublanes.
    xt = jnp.zeros((f_in, b_pad), dtype=jnp.float32).at[:, :B].set(x.T)

    w0, w1, w2 = params["w0"], params["w1"], params["w2"]
    b0 = params["b0"].reshape(-1, 1)
    b1 = params["b1"].reshape(-1, 1)
    b2 = params["b2"].reshape(-1, 1)

    def const_spec(a):
        nd = a.ndim
        return pl.BlockSpec(a.shape, lambda i, _nd=nd: (0,) * _nd)

    yt = pl.pallas_call(
        mlp_kernel,
        out_shape=jax.ShapeDtypeStruct((n_out, b_pad), jnp.float32),
        grid_spec=pltpu.PrefetchScalarGridSpec(
            num_scalar_prefetch=0,
            grid=(n_tiles,),
            in_specs=[
                pl.BlockSpec((f_in, tile_b), lambda i: (0, i)),   # x^T tile, batch on lanes
                const_spec(w0), const_spec(b0),
                const_spec(w1), const_spec(b1),
                const_spec(w2), const_spec(b2),
            ],
            out_specs=pl.BlockSpec((n_out, tile_b), lambda i: (0, i)),
        ),
        compiler_params=pltpu.CompilerParams(
            dimension_semantics=("parallel",)),   # batch axis shards across TCs on v7x
    )(xt, w0, b0, w1, b1, w2, b2)

    return yt[:, :B].T  # back to (B, 5)


def init_params(key, hidden_layers=2, hidden_nodes=8, in_nodes=7, out_nodes=5):
    """Mimic nn.Linear init: uniform(-1/sqrt(fan_in), 1/sqrt(fan_in)); PyTorch (out,in) layout."""
    params = {}
    dims = [in_nodes] + [hidden_nodes] * hidden_layers + [out_nodes]
    keys = jax.random.split(key, 2 * (len(dims) - 1))
    for li in range(len(dims) - 1):
        fan_in, fan_out = dims[li], dims[li + 1]
        bound = 1.0 / (fan_in ** 0.5)
        params[f"w{li}"] = jax.random.uniform(
            keys[2 * li], (fan_out, fan_in), minval=-bound, maxval=bound, dtype=jnp.float32)
        params[f"b{li}"] = jax.random.uniform(
            keys[2 * li + 1], (fan_out,), minval=-bound, maxval=bound, dtype=jnp.float32)
    return params


def reference_forward(x, params):
    h = jnp.maximum(x @ params["w0"].T + params["b0"], 0.0)
    h = jnp.maximum(h @ params["w1"].T + params["b1"], 0.0)
    return h @ params["w2"].T + params["b2"]


if __name__ == "__main__":
    key = jax.random.PRNGKey(0)
    k_params, k_x1, k_x2 = jax.random.split(key, 3)

    params = init_params(k_params, hidden_layers=2, hidden_nodes=8)

    # Small primary check (matches the module's expected (B, 7) input).
    B = 8
    x = jax.random.normal(k_x1, (B, 7), dtype=jnp.float32)
    y = jax.block_until_ready(custom_model_forward(x, params))
    y_ref = reference_forward(x, params)
    assert y.shape == (B, 5)
    assert jnp.allclose(y, y_ref, atol=1e-5, rtol=1e-5)

    # Secondary check: ragged batch + multi-step grid (exercises padding & pipelining).
    B2 = 300
    x2 = jax.random.normal(k_x2, (B2, 7), dtype=jnp.float32)
    y2 = jax.block_until_ready(custom_model_forward(x2, params, tile_b=128))
    y2_ref = reference_forward(x2, params)
    assert y2.shape == (B2, 5)
    assert jnp.allclose(y2, y2_ref, atol=1e-5, rtol=1e-5)

    print("KERNEL_OK")
</pallas_src>

<mosaic_0001>
module attributes {stable_mosaic.version = 11 : i64} {
  func.func @mlp_kernel(%arg0: i32, %arg1: memref<7x128xf32, #tpu.memory_space<vmem>>, %arg2: memref<8x7xf32, #tpu.memory_space<vmem>>, %arg3: memref<8x1xf32, #tpu.memory_space<vmem>>, %arg4: memref<8x8xf32, #tpu.memory_space<vmem>>, %arg5: memref<8x1xf32, #tpu.memory_space<vmem>>, %arg6: memref<5x8xf32, #tpu.memory_space<vmem>>, %arg7: memref<5x1xf32, #tpu.memory_space<vmem>>, %arg8: memref<5x128xf32, #tpu.memory_space<vmem>>) attributes {dimension_semantics = [#tpu.dimension_semantics<parallel>], iteration_bounds = array<i64: 1>, scalar_prefetch = 0 : i64, scratch_operands = 0 : i64, tpu.core_type = #tpu.core_type<tc>, window_params = [{transform_indices = @transform_0, window_bounds = array<i64: 7, 128>}, {pipeline_mode = #tpu.pipeline_mode<synchronous>, transform_indices = @transform_1, window_bounds = array<i64: 8, 7>}, {pipeline_mode = #tpu.pipeline_mode<synchronous>, transform_indices = @transform_2, window_bounds = array<i64: 8, 1>}, {pipeline_mode = #tpu.pipeline_mode<synchronous>, transform_indices = @transform_3, window_bounds = array<i64: 8, 8>}, {pipeline_mode = #tpu.pipeline_mode<synchronous>, transform_indices = @transform_4, window_bounds = array<i64: 8, 1>}, {pipeline_mode = #tpu.pipeline_mode<synchronous>, transform_indices = @transform_5, window_bounds = array<i64: 5, 8>}, {pipeline_mode = #tpu.pipeline_mode<synchronous>, transform_indices = @transform_6, window_bounds = array<i64: 5, 1>}, {transform_indices = @transform_7, window_bounds = array<i64: 5, 128>}]} {
    %c0 = arith.constant 0 : index
    %c0_0 = arith.constant 0 : index
    %0 = vector.load %arg1[%c0, %c0_0] : memref<7x128xf32, #tpu.memory_space<vmem>>, vector<7x128xf32>
    %c0_1 = arith.constant 0 : index
    %c0_2 = arith.constant 0 : index
    %1 = vector.load %arg2[%c0_1, %c0_2] : memref<8x7xf32, #tpu.memory_space<vmem>>, vector<8x7xf32>
    %c0_3 = arith.constant 0 : index
    %c0_4 = arith.constant 0 : index
    %2 = vector.load %arg3[%c0_3, %c0_4] : memref<8x1xf32, #tpu.memory_space<vmem>>, vector<8x1xf32>
    %3 = vector.shape_cast %2 : vector<8x1xf32> to vector<8x1xf32>
    %4 = vector.broadcast %3 : vector<8x1xf32> to vector<8x128xf32>
    %5 = vector.extract_strided_slice %1 {offsets = [0, 0], sizes = [8, 1], strides = [1, 1]} : vector<8x7xf32> to vector<8x1xf32>
    %6 = vector.extract_strided_slice %0 {offsets = [0, 0], sizes = [1, 128], strides = [1, 1]} : vector<7x128xf32> to vector<1x128xf32>
    %7 = vector.broadcast %5 : vector<8x1xf32> to vector<8x128xf32>
    %8 = vector.broadcast %6 : vector<1x128xf32> to vector<8x128xf32>
    %9 = arith.mulf %7, %8 : vector<8x128xf32>
    %10 = arith.addf %4, %9 : vector<8x128xf32>
    %11 = vector.extract_strided_slice %1 {offsets = [0, 1], sizes = [8, 1], strides = [1, 1]} : vector<8x7xf32> to vector<8x1xf32>
    %12 = vector.extract_strided_slice %0 {offsets = [1, 0], sizes = [1, 128], strides = [1, 1]} : vector<7x128xf32> to vector<1x128xf32>
    %13 = vector.broadcast %11 : vector<8x1xf32> to vector<8x128xf32>
    %14 = vector.broadcast %12 : vector<1x128xf32> to vector<8x128xf32>
    %15 = arith.mulf %13, %14 : vector<8x128xf32>
    %16 = arith.addf %10, %15 : vector<8x128xf32>
    %17 = vector.extract_strided_slice %1 {offsets = [0, 2], sizes = [8, 1], strides = [1, 1]} : vector<8x7xf32> to vector<8x1xf32>
    %18 = vector.extract_strided_slice %0 {offsets = [2, 0], sizes = [1, 128], strides = [1, 1]} : vector<7x128xf32> to vector<1x128xf32>
    %19 = vector.broadcast %17 : vector<8x1xf32> to vector<8x128xf32>
    %20 = vector.broadcast %18 : vector<1x128xf32> to vector<8x128xf32>
    %21 = arith.mulf %19, %20 : vector<8x128xf32>
    %22 = arith.addf %16, %21 : vector<8x128xf32>
    %23 = vector.extract_strided_slice %1 {offsets = [0, 3], sizes = [8, 1], strides = [1, 1]} : vector<8x7xf32> to vector<8x1xf32>
    %24 = vector.extract_strided_slice %0 {offsets = [3, 0], sizes = [1, 128], strides = [1, 1]} : vector<7x128xf32> to vector<1x128xf32>
    %25 = vector.broadcast %23 : vector<8x1xf32> to vector<8x128xf32>
    %26 = vector.broadcast %24 : vector<1x128xf32> to vector<8x128xf32>
    %27 = arith.mulf %25, %26 : vector<8x128xf32>
    %28 = arith.addf %22, %27 : vector<8x128xf32>
    %29 = vector.extract_strided_slice %1 {offsets = [0, 4], sizes = [8, 1], strides = [1, 1]} : vector<8x7xf32> to vector<8x1xf32>
    %30 = vector.extract_strided_slice %0 {offsets = [4, 0], sizes = [1, 128], strides = [1, 1]} : vector<7x128xf32> to vector<1x128xf32>
    %31 = vector.broadcast %29 : vector<8x1xf32> to vector<8x128xf32>
    %32 = vector.broadcast %30 : vector<1x128xf32> to vector<8x128xf32>
    %33 = arith.mulf %31, %32 : vector<8x128xf32>
    %34 = arith.addf %28, %33 : vector<8x128xf32>
    %35 = vector.extract_strided_slice %1 {offsets = [0, 5], sizes = [8, 1], strides = [1, 1]} : vector<8x7xf32> to vector<8x1xf32>
    %36 = vector.extract_strided_slice %0 {offsets = [5, 0], sizes = [1, 128], strides = [1, 1]} : vector<7x128xf32> to vector<1x128xf32>
    %37 = vector.broadcast %35 : vector<8x1xf32> to vector<8x128xf32>
    %38 = vector.broadcast %36 : vector<1x128xf32> to vector<8x128xf32>
    %39 = arith.mulf %37, %38 : vector<8x128xf32>
    %40 = arith.addf %34, %39 : vector<8x128xf32>
    %41 = vector.extract_strided_slice %1 {offsets = [0, 6], sizes = [8, 1], strides = [1, 1]} : vector<8x7xf32> to vector<8x1xf32>
    %42 = vector.extract_strided_slice %0 {offsets = [6, 0], sizes = [1, 128], strides = [1, 1]} : vector<7x128xf32> to vector<1x128xf32>
    %43 = vector.broadcast %41 : vector<8x1xf32> to vector<8x128xf32>
    %44 = vector.broadcast %42 : vector<1x128xf32> to vector<8x128xf32>
    %45 = arith.mulf %43, %44 : vector<8x128xf32>
    %46 = arith.addf %40, %45 : vector<8x128xf32>
    %cst = arith.constant 0.000000e+00 : f32
    %47 = vector.broadcast %cst : f32 to vector<8x128xf32>
    %48 = arith.maximumf %46, %47 : vector<8x128xf32>
    %c0_5 = arith.constant 0 : index
    %c0_6 = arith.constant 0 : index
    %49 = vector.load %arg4[%c0_5, %c0_6] : memref<8x8xf32, #tpu.memory_space<vmem>>, vector<8x8xf32>
    %c0_7 = arith.constant 0 : index
    %c0_8 = arith.constant 0 : index
    %50 = vector.load %arg5[%c0_7, %c0_8] : memref<8x1xf32, #tpu.memory_space<vmem>>, vector<8x1xf32>
    %51 = vector.shape_cast %50 : vector<8x1xf32> to vector<8x1xf32>
    %52 = vector.broadcast %51 : vector<8x1xf32> to vector<8x128xf32>
    %53 = vector.extract_strided_slice %49 {offsets = [0, 0], sizes = [8, 1], strides = [1, 1]} : vector<8x8xf32> to vector<8x1xf32>
    %54 = vector.extract_strided_slice %48 {offsets = [0, 0], sizes = [1, 128], strides = [1, 1]} : vector<8x128xf32> to vector<1x128xf32>
    %55 = vector.broadcast %53 : vector<8x1xf32> to vector<8x128xf32>
    %56 = vector.broadcast %54 : vector<1x128xf32> to vector<8x128xf32>
    %57 = arith.mulf %55, %56 : vector<8x128xf32>
    %58 = arith.addf %52, %57 : vector<8x128xf32>
    %59 = vector.extract_strided_slice %49 {offsets = [0, 1], sizes = [8, 1], strides = [1, 1]} : vector<8x8xf32> to vector<8x1xf32>
    %60 = vector.extract_strided_slice %48 {offsets = [1, 0], sizes = [1, 128], strides = [1, 1]} : vector<8x128xf32> to vector<1x128xf32>
    %61 = vector.broadcast %59 : vector<8x1xf32> to vector<8x128xf32>
    %62 = vector.broadcast %60 : vector<1x128xf32> to vector<8x128xf32>
    %63 = arith.mulf %61, %62 : vector<8x128xf32>
    %64 = arith.addf %58, %63 : vector<8x128xf32>
    %65 = vector.extract_strided_slice %49 {offsets = [0, 2], sizes = [8, 1], strides = [1, 1]} : vector<8x8xf32> to vector<8x1xf32>
    %66 = vector.extract_strided_slice %48 {offsets = [2, 0], sizes = [1, 128], strides = [1, 1]} : vector<8x128xf32> to vector<1x128xf32>
    %67 = vector.broadcast %65 : vector<8x1xf32> to vector<8x128xf32>
    %68 = vector.broadcast %66 : vector<1x128xf32> to vector<8x128xf32>
    %69 = arith.mulf %67, %68 : vector<8x128xf32>
    %70 = arith.addf %64, %69 : vector<8x128xf32>
    %71 = vector.extract_strided_slice %49 {offsets = [0, 3], sizes = [8, 1], strides = [1, 1]} : vector<8x8xf32> to vector<8x1xf32>
    %72 = vector.extract_strided_slice %48 {offsets = [3, 0], sizes = [1, 128], strides = [1, 1]} : vector<8x128xf32> to vector<1x128xf32>
    %73 = vector.broadcast %71 : vector<8x1xf32> to vector<8x128xf32>
    %74 = vector.broadcast %72 : vector<1x128xf32> to vector<8x128xf32>
    %75 = arith.mulf %73, %74 : vector<8x128xf32>
    %76 = arith.addf %70, %75 : vector<8x128xf32>
    %77 = vector.extract_strided_slice %49 {offsets = [0, 4], sizes = [8, 1], strides = [1, 1]} : vector<8x8xf32> to vector<8x1xf32>
    %78 = vector.extract_strided_slice %48 {offsets = [4, 0], sizes = [1, 128], strides = [1, 1]} : vector<8x128xf32> to vector<1x128xf32>
    %79 = vector.broadcast %77 : vector<8x1xf32> to vector<8x128xf32>
    %80 = vector.broadcast %78 : vector<1x128xf32> to vector<8x128xf32>
    %81 = arith.mulf %79, %80 : vector<8x128xf32>
    %82 = arith.addf %76, %81 : vector<8x128xf32>
    %83 = vector.extract_strided_slice %49 {offsets = [0, 5], sizes = [8, 1], strides = [1, 1]} : vector<8x8xf32> to vector<8x1xf32>
    %84 = vector.extract_strided_slice %48 {offsets = [5, 0], sizes = [1, 128], strides = [1, 1]} : vector<8x128xf32> to vector<1x128xf32>
    %85 = vector.broadcast %83 : vector<8x1xf32> to vector<8x128xf32>
    %86 = vector.broadcast %84 : vector<1x128xf32> to vector<8x128xf32>
    %87 = arith.mulf %85, %86 : vector<8x128xf32>
    %88 = arith.addf %82, %87 : vector<8x128xf32>
    %89 = vector.extract_strided_slice %49 {offsets = [0, 6], sizes = [8, 1], strides = [1, 1]} : vector<8x8xf32> to vector<8x1xf32>
    %90 = vector.extract_strided_slice %48 {offsets = [6, 0], sizes = [1, 128], strides = [1, 1]} : vector<8x128xf32> to vector<1x128xf32>
    %91 = vector.broadcast %89 : vector<8x1xf32> to vector<8x128xf32>
    %92 = vector.broadcast %90 : vector<1x128xf32> to vector<8x128xf32>
    %93 = arith.mulf %91, %92 : vector<8x128xf32>
    %94 = arith.addf %88, %93 : vector<8x128xf32>
    %95 = vector.extract_strided_slice %49 {offsets = [0, 7], sizes = [8, 1], strides = [1, 1]} : vector<8x8xf32> to vector<8x1xf32>
    %96 = vector.extract_strided_slice %48 {offsets = [7, 0], sizes = [1, 128], strides = [1, 1]} : vector<8x128xf32> to vector<1x128xf32>
    %97 = vector.broadcast %95 : vector<8x1xf32> to vector<8x128xf32>
    %98 = vector.broadcast %96 : vector<1x128xf32> to vector<8x128xf32>
    %99 = arith.mulf %97, %98 : vector<8x128xf32>
    %100 = arith.addf %94, %99 : vector<8x128xf32>
    %cst_9 = arith.constant 0.000000e+00 : f32
    %101 = vector.broadcast %cst_9 : f32 to vector<8x128xf32>
    %102 = arith.maximumf %100, %101 : vector<8x128xf32>
    %c0_10 = arith.constant 0 : index
    %c0_11 = arith.constant 0 : index
    %103 = vector.load %arg6[%c0_10, %c0_11] : memref<5x8xf32, #tpu.memory_space<vmem>>, vector<5x8xf32>
    %c0_12 = arith.constant 0 : index
    %c0_13 = arith.constant 0 : index
    %104 = vector.load %arg7[%c0_12, %c0_13] : memref<5x1xf32, #tpu.memory_space<vmem>>, vector<5x1xf32>
    %105 = vector.shape_cast %104 : vector<5x1xf32> to vector<5x1xf32>
    %106 = vector.broadcast %105 : vector<5x1xf32> to vector<5x128xf32>
    %107 = vector.extract_strided_slice %103 {offsets = [0, 0], sizes = [5, 1], strides = [1, 1]} : vector<5x8xf32> to vector<5x1xf32>
    %108 = vector.extract_strided_slice %102 {offsets = [0, 0], sizes = [1, 128], strides = [1, 1]} : vector<8x128xf32> to vector<1x128xf32>
    %109 = vector.broadcast %107 : vector<5x1xf32> to vector<5x128xf32>
    %110 = vector.broadcast %108 : vector<1x128xf32> to vector<5x128xf32>
    %111 = arith.mulf %109, %110 : vector<5x128xf32>
    %112 = arith.addf %106, %111 : vector<5x128xf32>
    %113 = vector.extract_strided_slice %103 {offsets = [0, 1], sizes = [5, 1], strides = [1, 1]} : vector<5x8xf32> to vector<5x1xf32>
    %114 = vector.extract_strided_slice %102 {offsets = [1, 0], sizes = [1, 128], strides = [1, 1]} : vector<8x128xf32> to vector<1x128xf32>
    %115 = vector.broadcast %113 : vector<5x1xf32> to vector<5x128xf32>
    %116 = vector.broadcast %114 : vector<1x128xf32> to vector<5x128xf32>
    %117 = arith.mulf %115, %116 : vector<5x128xf32>
    %118 = arith.addf %112, %117 : vector<5x128xf32>
    %119 = vector.extract_strided_slice %103 {offsets = [0, 2], sizes = [5, 1], strides = [1, 1]} : vector<5x8xf32> to vector<5x1xf32>
    %120 = vector.extract_strided_slice %102 {offsets = [2, 0], sizes = [1, 128], strides = [1, 1]} : vector<8x128xf32> to vector<1x128xf32>
    %121 = vector.broadcast %119 : vector<5x1xf32> to vector<5x128xf32>
    %122 = vector.broadcast %120 : vector<1x128xf32> to vector<5x128xf32>
    %123 = arith.mulf %121, %122 : vector<5x128xf32>
    %124 = arith.addf %118, %123 : vector<5x128xf32>
    %125 = vector.extract_strided_slice %103 {offsets = [0, 3], sizes = [5, 1], strides = [1, 1]} : vector<5x8xf32> to vector<5x1xf32>
    %126 = vector.extract_strided_slice %102 {offsets = [3, 0], sizes = [1, 128], strides = [1, 1]} : vector<8x128xf32> to vector<1x128xf32>
    %127 = vector.broadcast %125 : vector<5x1xf32> to vector<5x128xf32>
    %128 = vector.broadcast %126 : vector<1x128xf32> to vector<5x128xf32>
    %129 = arith.mulf %127, %128 : vector<5x128xf32>
    %130 = arith.addf %124, %129 : vector<5x128xf32>
    %131 = vector.extract_strided_slice %103 {offsets = [0, 4], sizes = [5, 1], strides = [1, 1]} : vector<5x8xf32> to vector<5x1xf32>
    %132 = vector.extract_strided_slice %102 {offsets = [4, 0], sizes = [1, 128], strides = [1, 1]} : vector<8x128xf32> to vector<1x128xf32>
    %133 = vector.broadcast %131 : vector<5x1xf32> to vector<5x128xf32>
    %134 = vector.broadcast %132 : vector<1x128xf32> to vector<5x128xf32>
    %135 = arith.mulf %133, %134 : vector<5x128xf32>
    %136 = arith.addf %130, %135 : vector<5x128xf32>
    %137 = vector.extract_strided_slice %103 {offsets = [0, 5], sizes = [5, 1], strides = [1, 1]} : vector<5x8xf32> to vector<5x1xf32>
    %138 = vector.extract_strided_slice %102 {offsets = [5, 0], sizes = [1, 128], strides = [1, 1]} : vector<8x128xf32> to vector<1x128xf32>
    %139 = vector.broadcast %137 : vector<5x1xf32> to vector<5x128xf32>
    %140 = vector.broadcast %138 : vector<1x128xf32> to vector<5x128xf32>
    %141 = arith.mulf %139, %140 : vector<5x128xf32>
    %142 = arith.addf %136, %141 : vector<5x128xf32>
    %143 = vector.extract_strided_slice %103 {offsets = [0, 6], sizes = [5, 1], strides = [1, 1]} : vector<5x8xf32> to vector<5x1xf32>
    %144 = vector.extract_strided_slice %102 {offsets = [6, 0], sizes = [1, 128], strides = [1, 1]} : vector<8x128xf32> to vector<1x128xf32>
    %145 = vector.broadcast %143 : vector<5x1xf32> to vector<5x128xf32>
    %146 = vector.broadcast %144 : vector<1x128xf32> to vector<5x128xf32>
    %147 = arith.mulf %145, %146 : vector<5x128xf32>
    %148 = arith.addf %142, %147 : vector<5x128xf32>
    %149 = vector.extract_strided_slice %103 {offsets = [0, 7], sizes = [5, 1], strides = [1, 1]} : vector<5x8xf32> to vector<5x1xf32>
    %150 = vector.extract_strided_slice %102 {offsets = [7, 0], sizes = [1, 128], strides = [1, 1]} : vector<8x128xf32> to vector<1x128xf32>
    %151 = vector.broadcast %149 : vector<5x1xf32> to vector<5x128xf32>
    %152 = vector.broadcast %150 : vector<1x128xf32> to vector<5x128xf32>
    %153 = arith.mulf %151, %152 : vector<5x128xf32>
    %154 = arith.addf %148, %153 : vector<5x128xf32>
    %c0_14 = arith.constant 0 : index
    %c0_15 = arith.constant 0 : index
    %155 = vector.load %arg8[%c0_14, %c0_15] : memref<5x128xf32, #tpu.memory_space<vmem>>, vector<5x128xf32>
    tpu.vector_store %arg8[%c0_14, %c0_15], %154 {strides = array<i32>} : memref<5x128xf32, #tpu.memory_space<vmem>>, vector<5x128xf32>,
    return
  }
  func.func @transform_0(%arg0: i32) -> (i32, i32) {
    %c0_i32 = arith.constant 0 : i32
    %c0_i32_0 = arith.constant 0 : i32
    return %c0_i32, %arg0 : i32, i32
  }
  func.func @transform_1(%arg0: i32) -> (i32, i32) {
    %c0_i32 = arith.constant 0 : i32
    %c0_i32_0 = arith.constant 0 : i32
    %c0_i32_1 = arith.constant 0 : i32
    return %c0_i32, %c0_i32_0 : i32, i32
  }
  func.func @transform_2(%arg0: i32) -> (i32, i32) {
    %c0_i32 = arith.constant 0 : i32
    %c0_i32_0 = arith.constant 0 : i32
    %c0_i32_1 = arith.constant 0 : i32
    return %c0_i32, %c0_i32_0 : i32, i32
  }
  func.func @transform_3(%arg0: i32) -> (i32, i32) {
    %c0_i32 = arith.constant 0 : i32
    %c0_i32_0 = arith.constant 0 : i32
    %c0_i32_1 = arith.constant 0 : i32
    return %c0_i32, %c0_i32_0 : i32, i32
  }
  func.func @transform_4(%arg0: i32) -> (i32, i32) {
    %c0_i32 = arith.constant 0 : i32
    %c0_i32_0 = arith.constant 0 : i32
    %c0_i32_1 = arith.constant 0 : i32
    return %c0_i32, %c0_i32_0 : i32, i32
  }
  func.func @transform_5(%arg0: i32) -> (i32, i32) {
    %c0_i32 = arith.constant 0 : i32
    %c0_i32_0 = arith.constant 0 : i32
    %c0_i32_1 = arith.constant 0 : i32
    return %c0_i32, %c0_i32_0 : i32, i32
  }
  func.func @transform_6(%arg0: i32) -> (i32, i32) {
    %c0_i32 = arith.constant 0 : i32
    %c0_i32_0 = arith.constant 0 : i32
    %c0_i32_1 = arith.constant 0 : i32
    return %c0_i32, %c0_i32_0 : i32, i32
  }
  func.func @transform_7(%arg0: i32) -> (i32, i32) {
    %c0_i32 = arith.constant 0 : i32
    %c0_i32_0 = arith.constant 0 : i32
    return %c0_i32, %arg0 : i32, i32
  }
}

</mosaic_0001>

<bundles_post_ra>
// kernel: tpu_custom_call.1
= control target key start
LH: loop header
LB: loop body
LE: loop exit
PB: predicated region body
PF: predicated region fallthrough
CT: control target
= control target key end

     0   :  { %v353_v1 = vmov 1   ;;  %v354_v2 = vmov 0   ;;  %s471_s0 = inlined_call_operand.vmem [shape: f32[7,128], index: 0, kind: input, shape index: {}]   ;;  %s472_s1 = inlined_call_operand.vmem [shape: f32[8,7], index: 1, kind: input, shape index: {}]   ;;  %s473_s2 = inlined_call_operand.vmem [shape: f32[8,1], index: 2, kind: input, shape index: {}]   ;;  %s474_s3 = inlined_call_operand.vmem [shape: f32[8,8], index: 3, kind: input, shape index: {}]   ;;  %s475_s4 = inlined_call_operand.vmem [shape: f32[8,1], index: 4, kind: input, shape index: {}]   ;;  %s476_s5 = inlined_call_operand.vmem [shape: f32[5,8], index: 5, kind: input, shape index: {}]   ;;  %s477_s6 = inlined_call_operand.vmem [shape: f32[5,1], index: 6, kind: input, shape index: {}]   ;;  %s478_s7 = inlined_call_operand.hbm [shape: f32[5,128], index: 7, kind: output, shape index: {}]  }
   0x1   :  { %v28_v0 = vld [vmem:[%s472_s1] sm:$0xff]  ;;  %309 = vset.pattern.permute.xlu1 %v353_v1  ;;  %308 = vset.pattern.permute.xlu0 %v354_v2 }
   0x2   :  { %47 = vperm.xlu1 %309, %v28_v0   ;;  %37 = vperm.xlu0 %308, %v28_v0   ;;  %v29_v3 = vld [vmem:[%s473_s2] sm:$0xff] }
   0x3   :  { %12 = vsyncpa [#allocation3], 0  ;;  %v355_v4 = vmov 2   ;;  %v356_v5 = vmov 3   ;;  %v357_v6 = vmov 4   ;;  %v358_v7 = vmov 6  }
   0x4   :  { %v359_v8 = vmov 5   ;;  %v107_v9 = vld [vmem:[%s474_s3] sm:$0xff]  ;;  %v360_v11 = vmov 7   ;;  %v40_v14 = vlaneseq }
   0x5   :  { %v108_v10 = vld [vmem:[%s475_s4] sm:$0xff] }
   0x6   :  { %310 = vset.pattern.permute.xlu1 %v355_v4  ;;  %32 = vperm.xlu0 %308, %v29_v3   ;;  %v196_v12 = vld [vmem:[%s476_s5] sm:$0x1f]  ;;  %v420_v15 = vshrl.u32 %v40_v14, 7 }
   0x7   :  { %57 = vperm.xlu1 %310, %v28_v0   ;;  %v197_v13 = vld [vmem:[%s477_s6] sm:$0x1f] }
   0x8   :  { %v423_v16 = vsub.s32 0, %v420_v15  ;;  %v27_v17 = vld [vmem:[%s471_s0] sm:$0x7f]  ;;  %v429_v18 = vsub.s32 1, %v420_v15  ;;  %v433_v20 = vsub.s32 2, %v420_v15  ;;  %v438_v26 = vsub.s32 3, %v420_v15 }
   0x9   :  { %v441_v28 = vsub.s32 4, %v420_v15  ;;  %v446_v36 = vsub.s32 5, %v420_v15  ;;  %v449_v37 = vsub.s32 6, %v420_v15  ;;  %s361_s0 = smov [#allocation2]  }
   0xa   :  { %311 = vset.pattern.permute.xlu0 %v356_v5  ;;  %v43_v19 = vrot.slane %v27_v17, %v423_v16  ;;  %v53_v23 = vrot.slane %v27_v17, %v429_v18  ;;  %v63_v25 = vrot.slane %v27_v17, %v433_v20  ;;  %v73_v33 = vrot.slane %v27_v17, %v438_v26  ;;  %s291_s6 = sshll.u32 %s361_s0, 4  ;;  %s292_s6 = int_to_ptr.vmem [resolvable:$true] %s291_s6 }
   0xb   :  { %312 = vset.pattern.permute.xlu1 %v357_v6  ;;  %67 = vperm.xlu0 %311, %v28_v0   ;;  %v83_v35 = vrot.slane %v27_v17, %v441_v28  ;;  %v93_v44 = vrot.slane %v27_v17, %v446_v36  ;;  %v103_v45 = vrot.slane %v27_v17, %v449_v37  ;;  %s331_s10 = scalar_lea.vmem %s292_s6, 128  ;;  %p336_p1 = scmp.lt.s32.totalorder %s292_s6, %s292_s6 }
   0xc   :  { %77 = vperm.xlu1 %312, %v28_v0   ;;  %p332_p0 = scmp.ne.s32.totalorder %s292_s6, %s331_s10  ;;  %p337_p2 = scmp.lt.s32.totalorder %s331_s10, %s331_s10 }
   0xe   :  { %p338_p3 = por %p337_p2, %p336_p1 }
   0xf   :  { %314 = vset.pattern.permute.xlu0 %v358_v7 }
  0x10   :  { %313 = vset.pattern.permute.xlu1 %v359_v8  ;;  %97 = vperm.xlu0 %314, %v28_v0   ;;  %p339_p4 = pnand %p338_p3, %p332_p0 }
  0x11   :  { %87 = vperm.xlu1 %313, %v28_v0  }
  0x14   :  { %316 = vset.pattern.permute.xlu0 %v353_v1 }
  0x15   :  { %315 = vset.pattern.permute.xlu1 %v354_v2  ;;  %126 = vperm.xlu0 %316, %v107_v9  }
  0x16   :  { %116 = vperm.xlu1 %315, %v107_v9  }
  0x19   :  { %319 = vset.pattern.permute.xlu0 %v357_v6 }
  0x1a   :  { %111 = vperm.xlu1 %315, %v108_v10   ;;  %156 = vperm.xlu0 %319, %v107_v9  }
  0x1e   :  { %317 = vset.pattern.permute.xlu1 %v355_v4  ;;  %322 = vset.pattern.permute.xlu0 %v360_v11 }
  0x1f   :  { %136 = vperm.xlu1 %317, %v107_v9   ;;  %186 = vperm.xlu0 %322, %v107_v9  }
  0x23   :  { %318 = vset.pattern.permute.xlu1 %v356_v5  ;;  %324 = vset.pattern.permute.xlu0 %v353_v1 }
  0x24   :  { %146 = vperm.xlu1 %318, %v107_v9   ;;  %215 = vperm.xlu0 %324, %v196_v12  }
  0x28   :  { %320 = vset.pattern.permute.xlu1 %v359_v8  ;;  %327 = vset.pattern.permute.xlu0 %v357_v6 }
  0x29   :  { %166 = vperm.xlu1 %320, %v107_v9   ;;  %245 = vperm.xlu0 %327, %v196_v12  }
  0x2d   :  { %321 = vset.pattern.permute.xlu1 %v358_v7  ;;  %330 = vset.pattern.permute.xlu0 %v360_v11 }
  0x2e   :  { %176 = vperm.xlu1 %321, %v107_v9   ;;  %275 = vperm.xlu0 %330, %v196_v12  }
  0x32   :  { %323 = vset.pattern.permute.xlu1 %v354_v2 }
  0x33   :  { %205 = vperm.xlu1 %323, %v196_v12  }
  0x37   :  { %200 = vperm.xlu1 %323, %v197_v13  }
  0x3b   :  { %325 = vset.pattern.permute.xlu1 %v355_v4 }
  0x3c   :  { %225 = vperm.xlu1 %325, %v196_v12  }
  0x40   :  { %326 = vset.pattern.permute.xlu1 %v356_v5 }
  0x41   :  { %235 = vperm.xlu1 %326, %v196_v12  }
  0x45   :  { %328 = vset.pattern.permute.xlu1 %v359_v8 }
  0x46   :  { %255 = vperm.xlu1 %328, %v196_v12  }
  0x4a   :  { %329 = vset.pattern.permute.xlu1 %v358_v7 }
  0x4b   :  { %265 = vperm.xlu1 %329, %v196_v12   ;;  %v191_v12 = vsub.s32 7, %v420_v15 }
  0x7d   :  { %v48_v21 = vpop.permute.xlu1 %47  ;;  %v38_v22 = vpop.permute.xlu0 %37 }
  0x7e   :  { %v44_v24 = vmul.f32 %v43_v19, %v38_v22  ;;  %v54_v29 = vmul.f32 %v53_v23, %v48_v21 }
  0x81   :  { %v33_v27 = vpop.permute.xlu0 %32 }
  0x82   :  { %v45_v30 = vadd.f32 %v44_v24, %v33_v27  ;;  %v58_v31 = vpop.permute.xlu1 %57 }
  0x83   :  { %v64_v32 = vmul.f32 %v63_v25, %v58_v31 }
  0x84   :  { %v55_v34 = vadd.f32 %v54_v29, %v45_v30 }
  0x86   :  { %v65_v38 = vadd.f32 %v64_v32, %v55_v34  ;;  %v68_v39 = vpop.permute.xlu0 %67 }
  0x87   :  { %v74_v40 = vmul.f32 %v73_v33, %v68_v39  ;;  %v78_v41 = vpop.permute.xlu1 %77 }
  0x88   :  { %v84_v43 = vmul.f32 %v83_v35, %v78_v41 }
  0x89   :  { %v75_v42 = vadd.f32 %v74_v40, %v65_v38 }
  0x8b   :  { %v98_v46 = vpop.permute.xlu0 %97  ;;  %v85_v48 = vadd.f32 %v84_v43, %v75_v42 }
  0x8c   :  { %v88_v47 = vpop.permute.xlu1 %87  ;;  %v104_v50 = vmul.f32 %v103_v45, %v98_v46 }
  0x8d   :  { %v94_v49 = vmul.f32 %v93_v44, %v88_v47 }
  0x8f   :  { %v95_v51 = vadd.f32 %v94_v49, %v85_v48 }
  0x90   :  { %v127_v59 = vpop.permute.xlu0 %126 }
  0x91   :  { %v105_v52 = vadd.f32 %v104_v50, %v95_v51  ;;  %v117_v53 = vpop.permute.xlu1 %116 }
  0x93   :  { %v106_v54 = vmax.f32 %v105_v52, 0.0 }
  0x95   :  { %v122_v55 = vrot.slane %v106_v54, %v423_v16  ;;  %v112_v56 = vpop.permute.xlu1 %111  ;;  %v132_v57 = vrot.slane %v106_v54, %v429_v18  ;;  %v142_v63 = vrot.slane %v106_v54, %v433_v20  ;;  %v152_v2 = vrot.slane %v106_v54, %v438_v26  ;;  %v157_v7 = vpop.permute.xlu0 %156 }
  0x96   :  { %v162_v4 = vrot.slane %v106_v54, %v441_v28  ;;  %v172_v11 = vrot.slane %v106_v54, %v446_v36  ;;  %v182_v17 = vrot.slane %v106_v54, %v449_v37  ;;  %v192_v22 = vrot.slane %v106_v54, %v191_v12 }
  0x97   :  { %v123_v58 = vmul.f32 %v122_v55, %v117_v53  ;;  %v133_v61 = vmul.f32 %v132_v57, %v127_v59 }
  0x98   :  { %v163_v9 = vmul.f32 %v162_v4, %v157_v7 }
  0x99   :  { %v124_v60 = vadd.f32 %v123_v58, %v112_v56 }
  0x9a   :  { %v137_v62 = vpop.permute.xlu1 %136  ;;  %v187_v19 = vpop.permute.xlu0 %186 }
  0x9b   :  { %v134_v0 = vadd.f32 %v133_v61, %v124_v60  ;;  %v143_v1 = vmul.f32 %v142_v63, %v137_v62  ;;  %v193_v25 = vmul.f32 %v192_v22, %v187_v19 }
  0x9d   :  { %v144_v5 = vadd.f32 %v143_v1, %v134_v0 }
  0x9f   :  { %v147_v3 = vpop.permute.xlu1 %146  ;;  %v216_v35 = vpop.permute.xlu0 %215 }
  0xa0   :  { %v153_v6 = vmul.f32 %v152_v2, %v147_v3 }
  0xa2   :  { %v154_v8 = vadd.f32 %v153_v6, %v144_v5 }
  0xa4   :  { %v167_v10 = vpop.permute.xlu1 %166  ;;  %v164_v13 = vadd.f32 %v163_v9, %v154_v8  ;;  %v246_v49 = vpop.permute.xlu0 %245 }
  0xa5   :  { %v173_v14 = vmul.f32 %v172_v11, %v167_v10 }
  0xa7   :  { %v174_v23 = vadd.f32 %v173_v14, %v164_v13 }
  0xa9   :  { %v177_v21 = vpop.permute.xlu1 %176  ;;  %v276_v55 = vpop.permute.xlu0 %275 }
  0xaa   :  { %v183_v24 = vmul.f32 %v182_v17, %v177_v21 }
  0xac   :  { %v184_v27 = vadd.f32 %v183_v24, %v174_v23 }
  0xae   :  { %v194_v29 = vadd.f32 %v193_v25, %v184_v27  ;;  %v206_v30 = vpop.permute.xlu1 %205 }
  0xb0   :  { %v195_v31 = vmax.f32 %v194_v29, 0.0 }
  0xb2   :  { %v211_v32 = vrot.slane %v195_v31, %v423_v16  ;;  %v201_v33 = vpop.permute.xlu1 %200  ;;  %v221_v34 = vrot.slane %v195_v31, %v429_v18  ;;  %v231_v41 = vrot.slane %v195_v31, %v433_v20  ;;  %v241_v44 = vrot.slane %v195_v31, %v438_v26 }
  0xb3   :  { %v251_v46 = vrot.slane %v195_v31, %v441_v28  ;;  %v261_v51 = vrot.slane %v195_v31, %v446_v36  ;;  %v281_v54 = vrot.slane %v195_v31, %v191_v12  ;;  %v271_v20 = vrot.slane %v195_v31, %v449_v37 }
  0xb4   :  { %v212_v15 = vmul.f32 %v211_v32, %v206_v30  ;;  %v222_v39 = vmul.f32 %v221_v34, %v216_v35 }
  0xb5   :  { %v252_v50 = vmul.f32 %v251_v46, %v246_v49  ;;  %v282_v28 = vmul.f32 %v281_v54, %v276_v55 }
  0xb6   :  { %v213_v38 = vadd.f32 %v212_v15, %v201_v33 }
  0xb7   :  { %v226_v40 = vpop.permute.xlu1 %225 }
  0xb8   :  { %v223_v42 = vadd.f32 %v222_v39, %v213_v38  ;;  %v232_v43 = vmul.f32 %v231_v41, %v226_v40 }
  0xba   :  { %v233_v47 = vadd.f32 %v232_v43, %v223_v42 }
  0xbc   :  { %v236_v45 = vpop.permute.xlu1 %235 }
  0xbd   :  { %v242_v48 = vmul.f32 %v241_v44, %v236_v45 }
  0xbf   :  { %v243_v16 = vadd.f32 %v242_v48, %v233_v47 }
  0xc1   :  { %v256_v18 = vpop.permute.xlu1 %255  ;;  %v253_v52 = vadd.f32 %v252_v50, %v243_v16 }
  0xc2   :  { %v262_v53 = vmul.f32 %v261_v51, %v256_v18 }
  0xc4   :  { %v263_v57 = vadd.f32 %v262_v53, %v253_v52 }
  0xc6   :  { %v266_v56 = vpop.permute.xlu1 %265 }
  0xc7   :  { %v272_v26 = vmul.f32 %v271_v20, %v266_v56 }
  0xc9   :  { %v273_v58 = vadd.f32 %v272_v26, %v263_v57 }
  0xcb   :  { %v283_v59 = vadd.f32 %v282_v28, %v273_v58 }
  0xcd   :  { %284 = vst [vmem:[#allocation2] sm:$0x1f] %v283_v59 }
  0xce   :  { %342 = shalt.err (!%p339_p4)
}
  0xcf   :  { %294 = dma.vmem_to_hbm [thread:$0]  %s292_s6, 128, %s478_s7, [#allocation3]  }
  0xd0   :  { %351 = dma.done.wait [#allocation3], 128  }
  0xd1   :  { %352 = vsyncadd [#allocation3], 4294967168 }
  0xd2   :  { %298 = vsyncpa [#allocation3], 1 }

</bundles_post_ra>
